<compile_context>
chip_gen: v7x
topology: tpu7x:2x2x1
jax: 0.10.0
libtpu: 0.0.40
codegen_flags: <defaults>
</compile_context>

<pallas_src>
import functools
import jax
import jax.numpy as jnp
from jax import lax
from jax.experimental import pallas as pl
from jax.experimental.pallas import tpu as pltpu


def _lstm_recurrence_kernel(gx_ref, whh_ref, y_ref, hn_ref, cn_ref,
                            h_scr, c_scr, *, hidden_dim, chunk, seq_len, masked):
    """One grid step = one (direction, time-chunk) of the BiLSTM recurrence.

    gx_ref : (1, Tc, B, 4H)  precomputed x @ W_ih^T + (b_ih + b_hh),
                             gate order [i, f, o, g], backward dir pre-reversed.
    whh_ref: (1, H, 4H)      W_hh^T for this direction, gate order [i, f, o, g].
    y_ref  : (1, Tc, B, H)   per-step hidden outputs (scan order).
    hn/cn  : (1, B, H)       final state for this direction.
    """
    H = hidden_dim
    c_idx = pl.program_id(1)
    last_chunk = pl.num_programs(1) - 1

    # New direction starts: reset the recurrent state.
    @pl.when(c_idx == 0)
    def _():
        h_scr[...] = jnp.zeros_like(h_scr)
        c_scr[...] = jnp.zeros_like(c_scr)

    whh = whh_ref[0]                      # (H, 4H), stays resident across chunks

    def step(j, carry):
        h_prev, c_prev = carry
        gx = gx_ref[0, j]                 # (B, 4H), bias already folded in
        gates = gx + jnp.dot(h_prev, whh, preferred_element_type=jnp.float32)

        # Gate order [i, f, o, g]: one contiguous sigmoid slice + one tanh slice.
        ifo = jax.nn.sigmoid(gates[:, : 3 * H])
        g = jnp.tanh(gates[:, 3 * H:])
        i_g = ifo[:, 0 * H:1 * H]
        f_g = ifo[:, 1 * H:2 * H]
        o_g = ifo[:, 2 * H:3 * H]

        c_new = f_g * c_prev + i_g * g
        h_new = o_g * jnp.tanh(c_new)

        if masked:  # only emitted when T was padded up to a chunk multiple
            valid = (c_idx * chunk + j) < seq_len
            h_new = jnp.where(valid, h_new, h_prev)
            c_new = jnp.where(valid, c_new, c_prev)

        # Store into the resident VMEM output block; HBM writeback happens once
        # per chunk when the output block index advances.
        y_ref[0, j] = h_new.astype(y_ref.dtype)
        return h_new, c_new

    h_fin, c_fin = lax.fori_loop(0, chunk, step, (h_scr[...], c_scr[...]),
                                 unroll=(chunk <= 16))
    h_scr[...] = h_fin
    c_scr[...] = c_fin

    @pl.when(c_idx == last_chunk)
    def _():
        hn_ref[0] = h_fin.astype(hn_ref.dtype)
        cn_ref[0] = c_fin.astype(cn_ref.dtype)


def bidirectional_lstm(x_btd, w_ih, w_hh, b_ih, b_hh, *, time_chunk=32):
    """x_btd: (B, T, I) float32 — PyTorch batch_first layout.

    w_ih: (2, 4H, I), w_hh: (2, 4H, H), b_ih/b_hh: (2, 4H)  (dir 0 = fwd, 1 = bwd)
    Returns (output (B, T, 2H), h_n (2, B, H), c_n (2, B, H)) like nn.LSTM.
    """
    B, T, I = x_btd.shape
    H = w_hh.shape[-1]
    G4 = 4 * H

    # ---- layout plumbing (outside the kernel) -------------------------------
    # PyTorch gate order is [i, f, g, o]; reorder to [i, f, o, g] so sigmoid is
    # applied to one contiguous 3H slice in-kernel.
    perm = jnp.concatenate([
        jnp.arange(0, 2 * H),        # i, f
        jnp.arange(3 * H, 4 * H),    # o
        jnp.arange(2 * H, 3 * H),    # g
    ])
    w_ih_r = w_ih[:, perm, :]                         # (2, 4H, I)
    w_hh_r = w_hh[:, perm, :]                         # (2, 4H, H)
    bias_r = (b_ih + b_hh)[:, perm]                   # (2, 4H)

    x_tbd = jnp.transpose(x_btd, (1, 0, 2)).astype(jnp.float32)   # (T, B, I)

    # Hoisted input projection: one big matmul over all T*B rows per direction.
    gates_x = jnp.einsum('tbi,dgi->dtbg', x_tbd, w_ih_r)          # (2, T, B, 4H)
    gates_x = gates_x + bias_r[:, None, None, :]

    # Scan-order inputs: forward as-is, backward reversed in time so the kernel
    # always scans forward (output is un-reversed in the wrapper).
    scan_gx = jnp.stack([gates_x[0], gates_x[1][::-1]], axis=0)   # (2, T, B, 4H)

    Tc = max(1, min(time_chunk, T))
    n_chunks = (T + Tc - 1) // Tc
    T_pad = n_chunks * Tc
    if T_pad != T:
        scan_gx = jnp.pad(scan_gx, ((0, 0), (0, T_pad - T), (0, 0), (0, 0)))

    whh_t = jnp.transpose(w_hh_r, (0, 2, 1))                      # (2, H, 4H)

    kernel = functools.partial(
        _lstm_recurrence_kernel, hidden_dim=H, chunk=Tc, seq_len=T,
        masked=(T_pad != T))

    y, h_n, c_n = pl.pallas_call(
        kernel,
        out_shape=(
            jax.ShapeDtypeStruct((2, T_pad, B, H), jnp.float32),  # scan-order outputs
            jax.ShapeDtypeStruct((2, B, H), jnp.float32),         # h_n
            jax.ShapeDtypeStruct((2, B, H), jnp.float32),         # c_n
        ),
        grid_spec=pltpu.PrefetchScalarGridSpec(
            num_scalar_prefetch=0,
            grid=(2, n_chunks),          # (direction, time-chunk)
            in_specs=[
                pl.BlockSpec((1, Tc, B, G4), lambda d, c: (d, c, 0, 0)),  # gates_x
                pl.BlockSpec((1, H, G4), lambda d, c: (d, 0, 0)),         # W_hh^T
            ],
            out_specs=[
                pl.BlockSpec((1, Tc, B, H), lambda d, c: (d, c, 0, 0)),   # y chunk
                pl.BlockSpec((1, B, H), lambda d, c: (d, 0, 0)),          # h_n
                pl.BlockSpec((1, B, H), lambda d, c: (d, 0, 0)),          # c_n
            ],
            scratch_shapes=[
                pltpu.VMEM((B, H), jnp.float32),   # h state (carried across chunks)
                pltpu.VMEM((B, H), jnp.float32),   # c state
            ],
        ),
        compiler_params=pltpu.CompilerParams(
            # directions are independent -> sharded across TensorCores on v7x;
            # the time-chunk axis carries the recurrence -> arbitrary.
            dimension_semantics=("parallel", "arbitrary")),
    )(scan_gx, whh_t)

    y_fwd = y[0, :T]            # (T, B, H) already in original time order
    y_bwd = y[1, :T][::-1]      # (T, B, H) back to original time order
    out = jnp.concatenate([y_fwd, y_bwd], axis=-1)   # (T, B, 2H) [fwd ; bwd]
    out = jnp.transpose(out, (1, 0, 2))              # (B, T, 2H)
    return out, h_n, c_n


def _reference_lstm(x_btd, w_ih, w_hh, b_ih, b_hh):
    """Pure-JAX reference (lax.scan) for correctness checking."""
    B, T, I = x_btd.shape
    H = w_hh.shape[-1]

    def run_dir(d, xs):  # xs: (T, B, I) already in scan order
        def step(carry, x_t):
            h, c = carry
            gates = x_t @ w_ih[d].T + h @ w_hh[d].T + b_ih[d] + b_hh[d]
            i = jax.nn.sigmoid(gates[:, 0 * H:1 * H])
            f = jax.nn.sigmoid(gates[:, 1 * H:2 * H])
            g = jnp.tanh(gates[:, 2 * H:3 * H])
            o = jax.nn.sigmoid(gates[:, 3 * H:4 * H])
            c = f * c + i * g
            h = o * jnp.tanh(c)
            return (h, c), h

        init = (jnp.zeros((B, H), jnp.float32), jnp.zeros((B, H), jnp.float32))
        (hT, cT), hs = jax.lax.scan(step, init, xs)
        return hs, hT, cT

    x_tbd = jnp.transpose(x_btd, (1, 0, 2))
    h_fwd, hf, cf = run_dir(0, x_tbd)                       # (T, B, H)
    h_bwd, hb, cb = run_dir(1, x_tbd[::-1])                 # (T, B, H) scan order
    out = jnp.concatenate([h_fwd, h_bwd[::-1]], axis=-1)    # (T, B, 2H)
    return (jnp.transpose(out, (1, 0, 2)),                  # (B, T, 2H)
            jnp.stack([hf, hb]), jnp.stack([cf, cb]))


if __name__ == "__main__":
    # Small shapes consistent with the module's forward (batch_first LSTM input).
    B, T, I, H = 2, 8, 16, 32

    key = jax.random.PRNGKey(0)
    k = 1.0 / jnp.sqrt(H)  # PyTorch default uniform(-1/sqrt(H), 1/sqrt(H))
    kx, k1, k2, k3, k4 = jax.random.split(key, 5)

    x = jax.random.normal(kx, (B, T, I), dtype=jnp.float32)
    w_ih = jax.random.uniform(k1, (2, 4 * H, I), jnp.float32, -k, k)
    w_hh = jax.random.uniform(k2, (2, 4 * H, H), jnp.float32, -k, k)
    b_ih = jax.random.uniform(k3, (2, 4 * H), jnp.float32, -k, k)
    b_hh = jax.random.uniform(k4, (2, 4 * H), jnp.float32, -k, k)

    # NOTE: dropout_p=0.3 is a no-op for num_layers=1 (PyTorch applies it only
    # between stacked layers), so it is intentionally not modeled.
    out, h_n, c_n = bidirectional_lstm(x, w_ih, w_hh, b_ih, b_hh)
    out = jax.block_until_ready(out)

    ref_out, ref_hn, ref_cn = _reference_lstm(x, w_ih, w_hh, b_ih, b_hh)
    assert out.shape == (B, T, 2 * H)
    assert h_n.shape == (2, B, H) and c_n.shape == (2, B, H)
    assert jnp.allclose(out, ref_out, atol=1e-5, rtol=1e-5), "output mismatch"
    assert jnp.allclose(h_n, ref_hn, atol=1e-5, rtol=1e-5), "h_n mismatch"
    assert jnp.allclose(c_n, ref_cn, atol=1e-5, rtol=1e-5), "c_n mismatch"

    print("KERNEL_OK")
</pallas_src>

<mosaic_0001>
module attributes {stable_mosaic.version = 11 : i64} {
  func.func @_lstm_recurrence_kernel(%arg0: i32, %arg1: i32, %arg2: memref<1x8x2x128xf32, #tpu.memory_space<vmem>>, %arg3: memref<1x32x128xf32, #tpu.memory_space<vmem>>, %arg4: memref<1x8x2x32xf32, #tpu.memory_space<vmem>>, %arg5: memref<1x2x32xf32, #tpu.memory_space<vmem>>, %arg6: memref<1x2x32xf32, #tpu.memory_space<vmem>>, %arg7: memref<2x32xf32, #tpu.memory_space<vmem>>, %arg8: memref<2x32xf32, #tpu.memory_space<vmem>>) attributes {dimension_semantics = [#tpu.dimension_semantics<parallel>, #tpu.dimension_semantics<arbitrary>], iteration_bounds = array<i64: 2, 1>, scalar_prefetch = 0 : i64, scratch_operands = 2 : i64, tpu.core_type = #tpu.core_type<tc>, window_params = [{transform_indices = @transform_0, window_bounds = array<i64: 1, 8, 2, 128>}, {transform_indices = @transform_1, window_bounds = array<i64: 1, 32, 128>}, {transform_indices = @transform_2, window_bounds = array<i64: 1, 8, 2, 32>}, {transform_indices = @transform_3, window_bounds = array<i64: 1, 2, 32>}, {transform_indices = @transform_4, window_bounds = array<i64: 1, 2, 32>}]} {
    %c0_i32 = arith.constant 0 : i32
    %0 = arith.cmpi eq, %arg1, %c0_i32 : i32
    %1 = arith.extui %0 : i1 to i32
    %c0_i32_0 = arith.constant 0 : i32
    %2 = arith.cmpi ne, %1, %c0_i32_0 : i32
    scf.if %2 {
      %cst_77 = arith.constant 0.000000e+00 : f32
      %212 = vector.broadcast %cst_77 : f32 to vector<2x32xf32>
      %c0_78 = arith.constant 0 : index
      %c0_79 = arith.constant 0 : index
      %213 = vector.load %arg7[%c0_78, %c0_79] : memref<2x32xf32, #tpu.memory_space<vmem>>, vector<2x32xf32>
      tpu.vector_store %arg7[%c0_78, %c0_79], %212 {strides = array<i32>} : memref<2x32xf32, #tpu.memory_space<vmem>>, vector<2x32xf32>,
      %cst_80 = arith.constant 0.000000e+00 : f32
      %214 = vector.broadcast %cst_80 : f32 to vector<2x32xf32>
      %c0_81 = arith.constant 0 : index
      %c0_82 = arith.constant 0 : index
      %215 = vector.load %arg8[%c0_81, %c0_82] : memref<2x32xf32, #tpu.memory_space<vmem>>, vector<2x32xf32>
      tpu.vector_store %arg8[%c0_81, %c0_82], %214 {strides = array<i32>} : memref<2x32xf32, #tpu.memory_space<vmem>>, vector<2x32xf32>,
    } else {
    }
    %c0 = arith.constant 0 : index
    %c0_1 = arith.constant 0 : index
    %c0_2 = arith.constant 0 : index
    %3 = vector.load %arg3[%c0, %c0_1, %c0_2] : memref<1x32x128xf32, #tpu.memory_space<vmem>>, vector<1x32x128xf32>
    %4 = vector.shape_cast %3 : vector<1x32x128xf32> to vector<32x128xf32>
    %c0_3 = arith.constant 0 : index
    %c0_4 = arith.constant 0 : index
    %5 = vector.load %arg7[%c0_3, %c0_4] : memref<2x32xf32, #tpu.memory_space<vmem>>, vector<2x32xf32>
    %c0_5 = arith.constant 0 : index
    %c0_6 = arith.constant 0 : index
    %6 = vector.load %arg8[%c0_5, %c0_6] : memref<2x32xf32, #tpu.memory_space<vmem>>, vector<2x32xf32>
    %c0_i32_7 = arith.constant 0 : i32
    %c0_8 = arith.constant 0 : index
    %7 = arith.index_cast %c0_i32_7 : i32 to index
    %c0_9 = arith.constant 0 : index
    %c0_10 = arith.constant 0 : index
    %8 = vector.load %arg2[%c0_8, %7, %c0_9, %c0_10] : memref<1x8x2x128xf32, #tpu.memory_space<vmem>>, vector<1x1x2x128xf32>
    %9 = vector.shape_cast %8 : vector<1x1x2x128xf32> to vector<2x128xf32>
    %cst = arith.constant dense<0.000000e+00> : vector<2x128xf32>
    %10 = tpu.matmul %5, %4, %cst {dimension_numbers = #tpu.dot_dimension_numbers<[1], [0], [0], [1], [0, 0, 1, 1], [], []>} : vector<2x32xf32>, vector<32x128xf32>, vector<2x128xf32> -> vector<2x128xf32>
    %11 = arith.addf %9, %10 : vector<2x128xf32>
    %12 = vector.extract_strided_slice %11 {offsets = [0, 0], sizes = [2, 96], strides = [1, 1]} : vector<2x128xf32> to vector<2x96xf32>
    %13 = arith.negf %12 : vector<2x96xf32>
    %14 = math.exp %13 : vector<2x96xf32>
    %cst_11 = arith.constant 1.000000e+00 : f32
    %15 = vector.broadcast %cst_11 : f32 to vector<2x96xf32>
    %16 = arith.addf %15, %14 : vector<2x96xf32>
    %17 = arith.divf %15, %16 : vector<2x96xf32>
    %18 = vector.extract_strided_slice %11 {offsets = [0, 96], sizes = [2, 32], strides = [1, 1]} : vector<2x128xf32> to vector<2x32xf32>
    %19 = math.tanh %18 : vector<2x32xf32>
    %20 = vector.extract_strided_slice %17 {offsets = [0, 0], sizes = [2, 32], strides = [1, 1]} : vector<2x96xf32> to vector<2x32xf32>
    %21 = vector.extract_strided_slice %17 {offsets = [0, 32], sizes = [2, 32], strides = [1, 1]} : vector<2x96xf32> to vector<2x32xf32>
    %22 = vector.extract_strided_slice %17 {offsets = [0, 64], sizes = [2, 32], strides = [1, 1]} : vector<2x96xf32> to vector<2x32xf32>
    %23 = arith.mulf %21, %6 : vector<2x32xf32>
    %24 = arith.mulf %20, %19 : vector<2x32xf32>
    %25 = arith.addf %23, %24 : vector<2x32xf32>
    %26 = math.tanh %25 : vector<2x32xf32>
    %27 = arith.mulf %22, %26 : vector<2x32xf32>
    %c0_12 = arith.constant 0 : index
    %28 = arith.index_cast %c0_i32_7 : i32 to index
    %c0_13 = arith.constant 0 : index
    %c0_14 = arith.constant 0 : index
    %29 = vector.load %arg4[%c0_12, %28, %c0_13, %c0_14] : memref<1x8x2x32xf32, #tpu.memory_space<vmem>>, vector<1x1x2x32xf32>
    %30 = vector.shape_cast %29 : vector<1x1x2x32xf32> to vector<2x32xf32>
    %31 = vector.shape_cast %27 : vector<2x32xf32> to vector<1x1x2x32xf32>
    tpu.vector_store %arg4[%c0_12, %28, %c0_13, %c0_14], %31 {strides = array<i32>} : memref<1x8x2x32xf32, #tpu.memory_space<vmem>>, vector<1x1x2x32xf32>,
    %c1_i32 = arith.constant 1 : i32
    %c0_15 = arith.constant 0 : index
    %32 = arith.index_cast %c1_i32 : i32 to index
    %c0_16 = arith.constant 0 : index
    %c0_17 = arith.constant 0 : index
    %33 = vector.load %arg2[%c0_15, %32, %c0_16, %c0_17] : memref<1x8x2x128xf32, #tpu.memory_space<vmem>>, vector<1x1x2x128xf32>
    %34 = vector.shape_cast %33 : vector<1x1x2x128xf32> to vector<2x128xf32>
    %cst_18 = arith.constant dense<0.000000e+00> : vector<2x128xf32>
    %35 = tpu.matmul %27, %4, %cst_18 {dimension_numbers = #tpu.dot_dimension_numbers<[1], [0], [0], [1], [0, 0, 1, 1], [], []>} : vector<2x32xf32>, vector<32x128xf32>, vector<2x128xf32> -> vector<2x128xf32>
    %36 = arith.addf %34, %35 : vector<2x128xf32>
    %37 = vector.extract_strided_slice %36 {offsets = [0, 0], sizes = [2, 96], strides = [1, 1]} : vector<2x128xf32> to vector<2x96xf32>
    %38 = arith.negf %37 : vector<2x96xf32>
    %39 = math.exp %38 : vector<2x96xf32>
    %cst_19 = arith.constant 1.000000e+00 : f32
    %40 = vector.broadcast %cst_19 : f32 to vector<2x96xf32>
    %41 = arith.addf %40, %39 : vector<2x96xf32>
    %42 = arith.divf %40, %41 : vector<2x96xf32>
    %43 = vector.extract_strided_slice %36 {offsets = [0, 96], sizes = [2, 32], strides = [1, 1]} : vector<2x128xf32> to vector<2x32xf32>
    %44 = math.tanh %43 : vector<2x32xf32>
    %45 = vector.extract_strided_slice %42 {offsets = [0, 0], sizes = [2, 32], strides = [1, 1]} : vector<2x96xf32> to vector<2x32xf32>
    %46 = vector.extract_strided_slice %42 {offsets = [0, 32], sizes = [2, 32], strides = [1, 1]} : vector<2x96xf32> to vector<2x32xf32>
    %47 = vector.extract_strided_slice %42 {offsets = [0, 64], sizes = [2, 32], strides = [1, 1]} : vector<2x96xf32> to vector<2x32xf32>
    %48 = arith.mulf %46, %25 : vector<2x32xf32>
    %49 = arith.mulf %45, %44 : vector<2x32xf32>
    %50 = arith.addf %48, %49 : vector<2x32xf32>
    %51 = math.tanh %50 : vector<2x32xf32>
    %52 = arith.mulf %47, %51 : vector<2x32xf32>
    %c0_20 = arith.constant 0 : index
    %53 = arith.index_cast %c1_i32 : i32 to index
    %c0_21 = arith.constant 0 : index
    %c0_22 = arith.constant 0 : index
    %54 = vector.load %arg4[%c0_20, %53, %c0_21, %c0_22] : memref<1x8x2x32xf32, #tpu.memory_space<vmem>>, vector<1x1x2x32xf32>
    %55 = vector.shape_cast %54 : vector<1x1x2x32xf32> to vector<2x32xf32>
    %56 = vector.shape_cast %52 : vector<2x32xf32> to vector<1x1x2x32xf32>
    tpu.vector_store %arg4[%c0_20, %53, %c0_21, %c0_22], %56 {strides = array<i32>} : memref<1x8x2x32xf32, #tpu.memory_space<vmem>>, vector<1x1x2x32xf32>,
    %c2_i32 = arith.constant 2 : i32
    %c0_23 = arith.constant 0 : index
    %57 = arith.index_cast %c2_i32 : i32 to index
    %c0_24 = arith.constant 0 : index
    %c0_25 = arith.constant 0 : index
    %58 = vector.load %arg2[%c0_23, %57, %c0_24, %c0_25] : memref<1x8x2x128xf32, #tpu.memory_space<vmem>>, vector<1x1x2x128xf32>
    %59 = vector.shape_cast %58 : vector<1x1x2x128xf32> to vector<2x128xf32>
    %cst_26 = arith.constant dense<0.000000e+00> : vector<2x128xf32>
    %60 = tpu.matmul %52, %4, %cst_26 {dimension_numbers = #tpu.dot_dimension_numbers<[1], [0], [0], [1], [0, 0, 1, 1], [], []>} : vector<2x32xf32>, vector<32x128xf32>, vector<2x128xf32> -> vector<2x128xf32>
    %61 = arith.addf %59, %60 : vector<2x128xf32>
    %62 = vector.extract_strided_slice %61 {offsets = [0, 0], sizes = [2, 96], strides = [1, 1]} : vector<2x128xf32> to vector<2x96xf32>
    %63 = arith.negf %62 : vector<2x96xf32>
    %64 = math.exp %63 : vector<2x96xf32>
    %cst_27 = arith.constant 1.000000e+00 : f32
    %65 = vector.broadcast %cst_27 : f32 to vector<2x96xf32>
    %66 = arith.addf %65, %64 : vector<2x96xf32>
    %67 = arith.divf %65, %66 : vector<2x96xf32>
    %68 = vector.extract_strided_slice %61 {offsets = [0, 96], sizes = [2, 32], strides = [1, 1]} : vector<2x128xf32> to vector<2x32xf32>
    %69 = math.tanh %68 : vector<2x32xf32>
    %70 = vector.extract_strided_slice %67 {offsets = [0, 0], sizes = [2, 32], strides = [1, 1]} : vector<2x96xf32> to vector<2x32xf32>
    %71 = vector.extract_strided_slice %67 {offsets = [0, 32], sizes = [2, 32], strides = [1, 1]} : vector<2x96xf32> to vector<2x32xf32>
    %72 = vector.extract_strided_slice %67 {offsets = [0, 64], sizes = [2, 32], strides = [1, 1]} : vector<2x96xf32> to vector<2x32xf32>
    %73 = arith.mulf %71, %50 : vector<2x32xf32>
    %74 = arith.mulf %70, %69 : vector<2x32xf32>
    %75 = arith.addf %73, %74 : vector<2x32xf32>
    %76 = math.tanh %75 : vector<2x32xf32>
    %77 = arith.mulf %72, %76 : vector<2x32xf32>
    %c0_28 = arith.constant 0 : index
    %78 = arith.index_cast %c2_i32 : i32 to index
    %c0_29 = arith.constant 0 : index
    %c0_30 = arith.constant 0 : index
    %79 = vector.load %arg4[%c0_28, %78, %c0_29, %c0_30] : memref<1x8x2x32xf32, #tpu.memory_space<vmem>>, vector<1x1x2x32xf32>
    %80 = vector.shape_cast %79 : vector<1x1x2x32xf32> to vector<2x32xf32>
    %81 = vector.shape_cast %77 : vector<2x32xf32> to vector<1x1x2x32xf32>
    tpu.vector_store %arg4[%c0_28, %78, %c0_29, %c0_30], %81 {strides = array<i32>} : memref<1x8x2x32xf32, #tpu.memory_space<vmem>>, vector<1x1x2x32xf32>,
    %c3_i32 = arith.constant 3 : i32
    %c0_31 = arith.constant 0 : index
    %82 = arith.index_cast %c3_i32 : i32 to index
    %c0_32 = arith.constant 0 : index
    %c0_33 = arith.constant 0 : index
    %83 = vector.load %arg2[%c0_31, %82, %c0_32, %c0_33] : memref<1x8x2x128xf32, #tpu.memory_space<vmem>>, vector<1x1x2x128xf32>
    %84 = vector.shape_cast %83 : vector<1x1x2x128xf32> to vector<2x128xf32>
    %cst_34 = arith.constant dense<0.000000e+00> : vector<2x128xf32>
    %85 = tpu.matmul %77, %4, %cst_34 {dimension_numbers = #tpu.dot_dimension_numbers<[1], [0], [0], [1], [0, 0, 1, 1], [], []>} : vector<2x32xf32>, vector<32x128xf32>, vector<2x128xf32> -> vector<2x128xf32>
    %86 = arith.addf %84, %85 : vector<2x128xf32>
    %87 = vector.extract_strided_slice %86 {offsets = [0, 0], sizes = [2, 96], strides = [1, 1]} : vector<2x128xf32> to vector<2x96xf32>
    %88 = arith.negf %87 : vector<2x96xf32>
    %89 = math.exp %88 : vector<2x96xf32>
    %cst_35 = arith.constant 1.000000e+00 : f32
    %90 = vector.broadcast %cst_35 : f32 to vector<2x96xf32>
    %91 = arith.addf %90, %89 : vector<2x96xf32>
    %92 = arith.divf %90, %91 : vector<2x96xf32>
    %93 = vector.extract_strided_slice %86 {offsets = [0, 96], sizes = [2, 32], strides = [1, 1]} : vector<2x128xf32> to vector<2x32xf32>
    %94 = math.tanh %93 : vector<2x32xf32>
    %95 = vector.extract_strided_slice %92 {offsets = [0, 0], sizes = [2, 32], strides = [1, 1]} : vector<2x96xf32> to vector<2x32xf32>
    %96 = vector.extract_strided_slice %92 {offsets = [0, 32], sizes = [2, 32], strides = [1, 1]} : vector<2x96xf32> to vector<2x32xf32>
    %97 = vector.extract_strided_slice %92 {offsets = [0, 64], sizes = [2, 32], strides = [1, 1]} : vector<2x96xf32> to vector<2x32xf32>
    %98 = arith.mulf %96, %75 : vector<2x32xf32>
    %99 = arith.mulf %95, %94 : vector<2x32xf32>
    %100 = arith.addf %98, %99 : vector<2x32xf32>
    %101 = math.tanh %100 : vector<2x32xf32>
    %102 = arith.mulf %97, %101 : vector<2x32xf32>
    %c0_36 = arith.constant 0 : index
    %103 = arith.index_cast %c3_i32 : i32 to index
    %c0_37 = arith.constant 0 : index
    %c0_38 = arith.constant 0 : index
    %104 = vector.load %arg4[%c0_36, %103, %c0_37, %c0_38] : memref<1x8x2x32xf32, #tpu.memory_space<vmem>>, vector<1x1x2x32xf32>
    %105 = vector.shape_cast %104 : vector<1x1x2x32xf32> to vector<2x32xf32>
    %106 = vector.shape_cast %102 : vector<2x32xf32> to vector<1x1x2x32xf32>
    tpu.vector_store %arg4[%c0_36, %103, %c0_37, %c0_38], %106 {strides = array<i32>} : memref<1x8x2x32xf32, #tpu.memory_space<vmem>>, vector<1x1x2x32xf32>,
    %c4_i32 = arith.constant 4 : i32
    %c0_39 = arith.constant 0 : index
    %107 = arith.index_cast %c4_i32 : i32 to index
    %c0_40 = arith.constant 0 : index
    %c0_41 = arith.constant 0 : index
    %108 = vector.load %arg2[%c0_39, %107, %c0_40, %c0_41] : memref<1x8x2x128xf32, #tpu.memory_space<vmem>>, vector<1x1x2x128xf32>
    %109 = vector.shape_cast %108 : vector<1x1x2x128xf32> to vector<2x128xf32>
    %cst_42 = arith.constant dense<0.000000e+00> : vector<2x128xf32>
    %110 = tpu.matmul %102, %4, %cst_42 {dimension_numbers = #tpu.dot_dimension_numbers<[1], [0], [0], [1], [0, 0, 1, 1], [], []>} : vector<2x32xf32>, vector<32x128xf32>, vector<2x128xf32> -> vector<2x128xf32>
    %111 = arith.addf %109, %110 : vector<2x128xf32>
    %112 = vector.extract_strided_slice %111 {offsets = [0, 0], sizes = [2, 96], strides = [1, 1]} : vector<2x128xf32> to vector<2x96xf32>
    %113 = arith.negf %112 : vector<2x96xf32>
    %114 = math.exp %113 : vector<2x96xf32>
    %cst_43 = arith.constant 1.000000e+00 : f32
    %115 = vector.broadcast %cst_43 : f32 to vector<2x96xf32>
    %116 = arith.addf %115, %114 : vector<2x96xf32>
    %117 = arith.divf %115, %116 : vector<2x96xf32>
    %118 = vector.extract_strided_slice %111 {offsets = [0, 96], sizes = [2, 32], strides = [1, 1]} : vector<2x128xf32> to vector<2x32xf32>
    %119 = math.tanh %118 : vector<2x32xf32>
    %120 = vector.extract_strided_slice %117 {offsets = [0, 0], sizes = [2, 32], strides = [1, 1]} : vector<2x96xf32> to vector<2x32xf32>
    %121 = vector.extract_strided_slice %117 {offsets = [0, 32], sizes = [2, 32], strides = [1, 1]} : vector<2x96xf32> to vector<2x32xf32>
    %122 = vector.extract_strided_slice %117 {offsets = [0, 64], sizes = [2, 32], strides = [1, 1]} : vector<2x96xf32> to vector<2x32xf32>
    %123 = arith.mulf %121, %100 : vector<2x32xf32>
    %124 = arith.mulf %120, %119 : vector<2x32xf32>
    %125 = arith.addf %123, %124 : vector<2x32xf32>
    %126 = math.tanh %125 : vector<2x32xf32>
    %127 = arith.mulf %122, %126 : vector<2x32xf32>
    %c0_44 = arith.constant 0 : index
    %128 = arith.index_cast %c4_i32 : i32 to index
    %c0_45 = arith.constant 0 : index
    %c0_46 = arith.constant 0 : index
    %129 = vector.load %arg4[%c0_44, %128, %c0_45, %c0_46] : memref<1x8x2x32xf32, #tpu.memory_space<vmem>>, vector<1x1x2x32xf32>
    %130 = vector.shape_cast %129 : vector<1x1x2x32xf32> to vector<2x32xf32>
    %131 = vector.shape_cast %127 : vector<2x32xf32> to vector<1x1x2x32xf32>
    tpu.vector_store %arg4[%c0_44, %128, %c0_45, %c0_46], %131 {strides = array<i32>} : memref<1x8x2x32xf32, #tpu.memory_space<vmem>>, vector<1x1x2x32xf32>,
    %c5_i32 = arith.constant 5 : i32
    %c0_47 = arith.constant 0 : index
    %132 = arith.index_cast %c5_i32 : i32 to index
    %c0_48 = arith.constant 0 : index
    %c0_49 = arith.constant 0 : index
    %133 = vector.load %arg2[%c0_47, %132, %c0_48, %c0_49] : memref<1x8x2x128xf32, #tpu.memory_space<vmem>>, vector<1x1x2x128xf32>
    %134 = vector.shape_cast %133 : vector<1x1x2x128xf32> to vector<2x128xf32>
    %cst_50 = arith.constant dense<0.000000e+00> : vector<2x128xf32>
    %135 = tpu.matmul %127, %4, %cst_50 {dimension_numbers = #tpu.dot_dimension_numbers<[1], [0], [0], [1], [0, 0, 1, 1], [], []>} : vector<2x32xf32>, vector<32x128xf32>, vector<2x128xf32> -> vector<2x128xf32>
    %136 = arith.addf %134, %135 : vector<2x128xf32>
    %137 = vector.extract_strided_slice %136 {offsets = [0, 0], sizes = [2, 96], strides = [1, 1]} : vector<2x128xf32> to vector<2x96xf32>
    %138 = arith.negf %137 : vector<2x96xf32>
    %139 = math.exp %138 : vector<2x96xf32>
    %cst_51 = arith.constant 1.000000e+00 : f32
    %140 = vector.broadcast %cst_51 : f32 to vector<2x96xf32>
    %141 = arith.addf %140, %139 : vector<2x96xf32>
    %142 = arith.divf %140, %141 : vector<2x96xf32>
    %143 = vector.extract_strided_slice %136 {offsets = [0, 96], sizes = [2, 32], strides = [1, 1]} : vector<2x128xf32> to vector<2x32xf32>
    %144 = math.tanh %143 : vector<2x32xf32>
    %145 = vector.extract_strided_slice %142 {offsets = [0, 0], sizes = [2, 32], strides = [1, 1]} : vector<2x96xf32> to vector<2x32xf32>
    %146 = vector.extract_strided_slice %142 {offsets = [0, 32], sizes = [2, 32], strides = [1, 1]} : vector<2x96xf32> to vector<2x32xf32>
    %147 = vector.extract_strided_slice %142 {offsets = [0, 64], sizes = [2, 32], strides = [1, 1]} : vector<2x96xf32> to vector<2x32xf32>
    %148 = arith.mulf %146, %125 : vector<2x32xf32>
    %149 = arith.mulf %145, %144 : vector<2x32xf32>
    %150 = arith.addf %148, %149 : vector<2x32xf32>
    %151 = math.tanh %150 : vector<2x32xf32>
    %152 = arith.mulf %147, %151 : vector<2x32xf32>
    %c0_52 = arith.constant 0 : index
    %153 = arith.index_cast %c5_i32 : i32 to index
    %c0_53 = arith.constant 0 : index
    %c0_54 = arith.constant 0 : index
    %154 = vector.load %arg4[%c0_52, %153, %c0_53, %c0_54] : memref<1x8x2x32xf32, #tpu.memory_space<vmem>>, vector<1x1x2x32xf32>
    %155 = vector.shape_cast %154 : vector<1x1x2x32xf32> to vector<2x32xf32>
    %156 = vector.shape_cast %152 : vector<2x32xf32> to vector<1x1x2x32xf32>
    tpu.vector_store %arg4[%c0_52, %153, %c0_53, %c0_54], %156 {strides = array<i32>} : memref<1x8x2x32xf32, #tpu.memory_space<vmem>>, vector<1x1x2x32xf32>,
    %c6_i32 = arith.constant 6 : i32
    %c0_55 = arith.constant 0 : index
    %157 = arith.index_cast %c6_i32 : i32 to index
    %c0_56 = arith.constant 0 : index
    %c0_57 = arith.constant 0 : index
    %158 = vector.load %arg2[%c0_55, %157, %c0_56, %c0_57] : memref<1x8x2x128xf32, #tpu.memory_space<vmem>>, vector<1x1x2x128xf32>
    %159 = vector.shape_cast %158 : vector<1x1x2x128xf32> to vector<2x128xf32>
    %cst_58 = arith.constant dense<0.000000e+00> : vector<2x128xf32>
    %160 = tpu.matmul %152, %4, %cst_58 {dimension_numbers = #tpu.dot_dimension_numbers<[1], [0], [0], [1], [0, 0, 1, 1], [], []>} : vector<2x32xf32>, vector<32x128xf32>, vector<2x128xf32> -> vector<2x128xf32>
    %161 = arith.addf %159, %160 : vector<2x128xf32>
    %162 = vector.extract_strided_slice %161 {offsets = [0, 0], sizes = [2, 96], strides = [1, 1]} : vector<2x128xf32> to vector<2x96xf32>
    %163 = arith.negf %162 : vector<2x96xf32>
    %164 = math.exp %163 : vector<2x96xf32>
    %cst_59 = arith.constant 1.000000e+00 : f32
    %165 = vector.broadcast %cst_59 : f32 to vector<2x96xf32>
    %166 = arith.addf %165, %164 : vector<2x96xf32>
    %167 = arith.divf %165, %166 : vector<2x96xf32>
    %168 = vector.extract_strided_slice %161 {offsets = [0, 96], sizes = [2, 32], strides = [1, 1]} : vector<2x128xf32> to vector<2x32xf32>
    %169 = math.tanh %168 : vector<2x32xf32>
    %170 = vector.extract_strided_slice %167 {offsets = [0, 0], sizes = [2, 32], strides = [1, 1]} : vector<2x96xf32> to vector<2x32xf32>
    %171 = vector.extract_strided_slice %167 {offsets = [0, 32], sizes = [2, 32], strides = [1, 1]} : vector<2x96xf32> to vector<2x32xf32>
    %172 = vector.extract_strided_slice %167 {offsets = [0, 64], sizes = [2, 32], strides = [1, 1]} : vector<2x96xf32> to vector<2x32xf32>
    %173 = arith.mulf %171, %150 : vector<2x32xf32>
    %174 = arith.mulf %170, %169 : vector<2x32xf32>
    %175 = arith.addf %173, %174 : vector<2x32xf32>
    %176 = math.tanh %175 : vector<2x32xf32>
    %177 = arith.mulf %172, %176 : vector<2x32xf32>
    %c0_60 = arith.constant 0 : index
    %178 = arith.index_cast %c6_i32 : i32 to index
    %c0_61 = arith.constant 0 : index
    %c0_62 = arith.constant 0 : index
    %179 = vector.load %arg4[%c0_60, %178, %c0_61, %c0_62] : memref<1x8x2x32xf32, #tpu.memory_space<vmem>>, vector<1x1x2x32xf32>
    %180 = vector.shape_cast %179 : vector<1x1x2x32xf32> to vector<2x32xf32>
    %181 = vector.shape_cast %177 : vector<2x32xf32> to vector<1x1x2x32xf32>
    tpu.vector_store %arg4[%c0_60, %178, %c0_61, %c0_62], %181 {strides = array<i32>} : memref<1x8x2x32xf32, #tpu.memory_space<vmem>>, vector<1x1x2x32xf32>,
    %c7_i32 = arith.constant 7 : i32
    %c0_63 = arith.constant 0 : index
    %182 = arith.index_cast %c7_i32 : i32 to index
    %c0_64 = arith.constant 0 : index
    %c0_65 = arith.constant 0 : index
    %183 = vector.load %arg2[%c0_63, %182, %c0_64, %c0_65] : memref<1x8x2x128xf32, #tpu.memory_space<vmem>>, vector<1x1x2x128xf32>
    %184 = vector.shape_cast %183 : vector<1x1x2x128xf32> to vector<2x128xf32>
    %cst_66 = arith.constant dense<0.000000e+00> : vector<2x128xf32>
    %185 = tpu.matmul %177, %4, %cst_66 {dimension_numbers = #tpu.dot_dimension_numbers<[1], [0], [0], [1], [0, 0, 1, 1], [], []>} : vector<2x32xf32>, vector<32x128xf32>, vector<2x128xf32> -> vector<2x128xf32>
    %186 = arith.addf %184, %185 : vector<2x128xf32>
    %187 = vector.extract_strided_slice %186 {offsets = [0, 0], sizes = [2, 96], strides = [1, 1]} : vector<2x128xf32> to vector<2x96xf32>
    %188 = arith.negf %187 : vector<2x96xf32>
    %189 = math.exp %188 : vector<2x96xf32>
    %cst_67 = arith.constant 1.000000e+00 : f32
    %190 = vector.broadcast %cst_67 : f32 to vector<2x96xf32>
    %191 = arith.addf %190, %189 : vector<2x96xf32>
    %192 = arith.divf %190, %191 : vector<2x96xf32>
    %193 = vector.extract_strided_slice %186 {offsets = [0, 96], sizes = [2, 32], strides = [1, 1]} : vector<2x128xf32> to vector<2x32xf32>
    %194 = math.tanh %193 : vector<2x32xf32>
    %195 = vector.extract_strided_slice %192 {offsets = [0, 0], sizes = [2, 32], strides = [1, 1]} : vector<2x96xf32> to vector<2x32xf32>
    %196 = vector.extract_strided_slice %192 {offsets = [0, 32], sizes = [2, 32], strides = [1, 1]} : vector<2x96xf32> to vector<2x32xf32>
    %197 = vector.extract_strided_slice %192 {offsets = [0, 64], sizes = [2, 32], strides = [1, 1]} : vector<2x96xf32> to vector<2x32xf32>
    %198 = arith.mulf %196, %175 : vector<2x32xf32>
    %199 = arith.mulf %195, %194 : vector<2x32xf32>
    %200 = arith.addf %198, %199 : vector<2x32xf32>
    %201 = math.tanh %200 : vector<2x32xf32>
    %202 = arith.mulf %197, %201 : vector<2x32xf32>
    %c0_68 = arith.constant 0 : index
    %203 = arith.index_cast %c7_i32 : i32 to index
    %c0_69 = arith.constant 0 : index
    %c0_70 = arith.constant 0 : index
    %204 = vector.load %arg4[%c0_68, %203, %c0_69, %c0_70] : memref<1x8x2x32xf32, #tpu.memory_space<vmem>>, vector<1x1x2x32xf32>
    %205 = vector.shape_cast %204 : vector<1x1x2x32xf32> to vector<2x32xf32>
    %206 = vector.shape_cast %202 : vector<2x32xf32> to vector<1x1x2x32xf32>
    tpu.vector_store %arg4[%c0_68, %203, %c0_69, %c0_70], %206 {strides = array<i32>} : memref<1x8x2x32xf32, #tpu.memory_space<vmem>>, vector<1x1x2x32xf32>,
    %c8_i32 = arith.constant 8 : i32
    %c0_71 = arith.constant 0 : index
    %c0_72 = arith.constant 0 : index
    %207 = vector.load %arg7[%c0_71, %c0_72] : memref<2x32xf32, #tpu.memory_space<vmem>>, vector<2x32xf32>
    tpu.vector_store %arg7[%c0_71, %c0_72], %202 {strides = array<i32>} : memref<2x32xf32, #tpu.memory_space<vmem>>, vector<2x32xf32>,
    %c0_73 = arith.constant 0 : index
    %c0_74 = arith.constant 0 : index
    %208 = vector.load %arg8[%c0_73, %c0_74] : memref<2x32xf32, #tpu.memory_space<vmem>>, vector<2x32xf32>
    tpu.vector_store %arg8[%c0_73, %c0_74], %200 {strides = array<i32>} : memref<2x32xf32, #tpu.memory_space<vmem>>, vector<2x32xf32>,
    %c0_i32_75 = arith.constant 0 : i32
    %209 = arith.cmpi eq, %arg1, %c0_i32_75 : i32
    %210 = arith.extui %209 : i1 to i32
    %c0_i32_76 = arith.constant 0 : i32
    %211 = arith.cmpi ne, %210, %c0_i32_76 : i32
    scf.if %211 {
      %c0_77 = arith.constant 0 : index
      %c0_78 = arith.constant 0 : index
      %c0_79 = arith.constant 0 : index
      %212 = vector.load %arg5[%c0_77, %c0_78, %c0_79] : memref<1x2x32xf32, #tpu.memory_space<vmem>>, vector<1x2x32xf32>
      %213 = vector.shape_cast %212 : vector<1x2x32xf32> to vector<2x32xf32>
      %214 = vector.shape_cast %202 : vector<2x32xf32> to vector<1x2x32xf32>
      tpu.vector_store %arg5[%c0_77, %c0_78, %c0_79], %214 {strides = array<i32>} : memref<1x2x32xf32, #tpu.memory_space<vmem>>, vector<1x2x32xf32>,
      %c0_80 = arith.constant 0 : index
      %c0_81 = arith.constant 0 : index
      %c0_82 = arith.constant 0 : index
      %215 = vector.load %arg6[%c0_80, %c0_81, %c0_82] : memref<1x2x32xf32, #tpu.memory_space<vmem>>, vector<1x2x32xf32>
      %216 = vector.shape_cast %215 : vector<1x2x32xf32> to vector<2x32xf32>
      %217 = vector.shape_cast %200 : vector<2x32xf32> to vector<1x2x32xf32>
      tpu.vector_store %arg6[%c0_80, %c0_81, %c0_82], %217 {strides = array<i32>} : memref<1x2x32xf32, #tpu.memory_space<vmem>>, vector<1x2x32xf32>,
    } else {
    }
    return
  }
  func.func @transform_0(%arg0: i32, %arg1: i32) -> (i32, i32, i32, i32) {
    %c0_i32 = arith.constant 0 : i32
    %c0_i32_0 = arith.constant 0 : i32
    %c0_i32_1 = arith.constant 0 : i32
    return %arg0, %arg1, %c0_i32, %c0_i32_0 : i32, i32, i32, i32
  }
  func.func @transform_1(%arg0: i32, %arg1: i32) -> (i32, i32, i32) {
    %c0_i32 = arith.constant 0 : i32
    %c0_i32_0 = arith.constant 0 : i32
    %c0_i32_1 = arith.constant 0 : i32
    return %arg0, %c0_i32, %c0_i32_0 : i32, i32, i32
  }
  func.func @transform_2(%arg0: i32, %arg1: i32) -> (i32, i32, i32, i32) {
    %c0_i32 = arith.constant 0 : i32
    %c0_i32_0 = arith.constant 0 : i32
    %c0_i32_1 = arith.constant 0 : i32
    return %arg0, %arg1, %c0_i32, %c0_i32_0 : i32, i32, i32, i32
  }
  func.func @transform_3(%arg0: i32, %arg1: i32) -> (i32, i32, i32) {
    %c0_i32 = arith.constant 0 : i32
    %c0_i32_0 = arith.constant 0 : i32
    %c0_i32_1 = arith.constant 0 : i32
    return %arg0, %c0_i32, %c0_i32_0 : i32, i32, i32
  }
  func.func @transform_4(%arg0: i32, %arg1: i32) -> (i32, i32, i32) {
    %c0_i32 = arith.constant 0 : i32
    %c0_i32_0 = arith.constant 0 : i32
    %c0_i32_1 = arith.constant 0 : i32
    return %arg0, %c0_i32, %c0_i32_0 : i32, i32, i32
  }
}

</mosaic_0001>

<bundles_post_ra>
// kernel: tpu_custom_call.1
= control target key start
LH: loop header
LB: loop body
LE: loop exit
PB: predicated region body
PF: predicated region fallthrough
CT: control target
= control target key end

     0   :  { %s2453_s0 = inlined_call_operand.hbm [shape: f32[2,8,2,128], index: 0, kind: input, shape index: {}]   ;;  %s2454_s1 = inlined_call_operand.hbm [shape: f32[2,32,128], index: 1, kind: input, shape index: {}]   ;;  %s2455_s2 = inlined_call_operand.hbm [shape: f32[2,8,2,32], index: 2, kind: output, shape index: {0}]   ;;  %s2456_s3 = inlined_call_operand.hbm [shape: f32[2,2,32], index: 3, kind: output, shape index: {1}]   ;;  %s2457_s4 = inlined_call_operand.hbm [shape: f32[2,2,32], index: 4, kind: output, shape index: {2}]  }
   0x1   :  { %2462 = sst [smem:[#allocation17_spill]] %s2453_s0 }
   0x2   :  { %10 = vsyncpa [#allocation5], 0 }
   0x3   :  { %12 = vsyncpa [#allocation5 + $0x1], 0 }
   0x4   :  { %13 = vsyncpa [#allocation8], 0 }
   0x5   :  { %15 = vsyncpa [#allocation8 + $0x1], 0 }
   0x6   :  { %16 = vsyncpa [#allocation6], 0 }
   0x7   :  { %18 = vsyncpa [#allocation6 + $0x1], 0 }
   0x8   :  { %19 = vsyncpa [#allocation11], 0 }
   0x9   :  { %21 = vsyncpa [#allocation11 + $0x1], 0  ;;  %s2021_s15 = smov 0   ;;  %s2023_s16 = smov 0  }
   0xa   :  { %s2025_s17 = smov 0   ;;  %s2027_s18 = smov 0  }
   0xb   :  { %s2029_s19 = smov 0   ;;  %s2031_s20 = smov 0  }
   0xc LB: > { %s2052_s21 = sadd.s32 4294967295, %s1978_s20   ;;  %s2459_s22 = sadd.s32 4294967294, %s1978_s20   ;;  %s1978_s20 = sphi %s2031_s20, %s27_s20   ;;  %s1974_s19 = sphi %s2029_s19, %s2481_s19   ;;  %s1970_s18 = sphi %s2027_s18, %s2480_s18   ;;  %s1966_s17 = sphi %s2025_s17, %s2479_s17   ;;  %s1962_s16 = sphi %s2023_s16, %s2478_s16   ;;  %s1958_s15 = sphi %s2021_s15, %s2477_s15  }
   0xd   : > { %s39_s23 = sadd.s32 1, %s1974_s19  ;;  %s48_s24 = sadd.s32 1, %s1966_s17 }
   0xe   : > { %p41_p0 = scmp.ge.s32.totalorder %s39_s23, 2  ;;  %p55_p1 = scmp.ne.s32.totalorder %s1966_s17, %s1962_s16 }
   0xf   : > { %p56_p2 = scmp.eq.s32.totalorder %s1978_s20, 0  ;;  %p61_p3 = scmp.ne.s32.totalorder %s1962_s16, %s1958_s15 }
  0x10   : > { %s2483_s23 = smov (%p41_p0, %s39_s23), 0  ;;  %p62_p5 = scmp.eq.s32.totalorder %s2052_s21, 0 }
  0x11   : > { %p2064_p4 = por %p56_p2, %p55_p1  ;;  %s43_s26 = ssub.s32 %s1974_s19, %s2483_s23 }
  0x12   : > { %p113_p6 = scmp.eq.s32.totalorder %s2052_s21, 1  ;;  %p46_p7 = scmp.eq.s32.totalorder %s43_s26, 0 }
  0x13   : > { %p2072_p8 = por %p62_p5, %p61_p3  ;;  %p119_p10 = scmp.eq.s32.totalorder %s2459_s22, 1 }
  0x14   : > { %p2076_p9 = por %p113_p6, %p55_p1  ;;  %p1647_p13 = scmp.lt.s32.totalorder %s1978_s20, 2 }
  0x15   : > { %s2464_s27 = scalar_select %p2072_p8, 1, 0 }
  0x16   : > { %s2465_s28 = scalar_select %p2076_p9, 1, 0 }
  0x17   : > { %s2083_s29 = scalar_select %p46_p7, %s1966_s17, %s48_s24  }
  0x18   : > { %p2085_p11 = por %p119_p10, %p61_p3  ;;  %s2092_s5 = sand.u32 1, %s1966_s17  }
  0x19   : > { %s1390_s6 = sshll.u32 %s2092_s5, 4  ;;  %s1441_s7 = sshll.u32 %s1974_s19, 8 }
  0x1a   : > { %s2466_s30 = scalar_select %p2085_p11, 1, 0 }
  0x1b   : > { %s2467_s0 = sld [smem:[#allocation17_spill]]  ;;  %s195_s11 = scalar_lea.vmem [#allocation4], %s1390_s6 }
  0x1c   : > { %s204_s12 = sshll.u32 %s195_s11, 4  ;;  %p2105_p0 = pnand %p1647_p13, %p2064_p4  ;;  %s2101_s12 = int_to_ptr.vmem [resolvable:$true] %s204_s12 }
  0x1d   : > { %s192_s14 = scalar_lea.sflag [#allocation5], %s2092_s5 }
  0x1e   : > { %p1774_p3 = pneg %p2105_p0 }
  0x21   : > { %s2099_s10 = scalar_lea.hbm %s2467_s0, %s1441_s7  ;;  %s1777_s25 = scalar_lea.hbm %s2467_s0, 512 }
  0x22   : > { %s1772_s24 = scalar_lea.hbm %s2099_s10, 256  ;;  %p1778_p4 = scmp.lt.u32.totalorder %s2099_s10, %s2467_s0 }
  0x23   : > { %p1773_p2 = scmp.ne.s32.totalorder %s2099_s10, %s1772_s24  ;;  %p1779_p7 = scmp.lt.u32.totalorder %s1777_s25, %s1772_s24 }
  0x24   : > { %p1781_p13 = scmp.lt.u32.totalorder %s1772_s24, %s2099_s10 }
  0x25   : > { %p1775_p5 = pnand %p1774_p3, %p1773_p2  ;;  %p1780_p10 = por %p1779_p7, %p1778_p4 }
  0x27   : > { %p1776_p6 = pneg %p1775_p5  ;;  %p1782_p12 = por %p1781_p13, %p1780_p10 }
  0x29   : > { %p1783_p1 = pnand %p1782_p12, %p1776_p6 }
  0x2b   : > { %1786 = shalt.err (!%p1783_p1)
}
  0x2c   : > { %s1787_s9 = scalar_lea.vmem %s2101_s12, 256  ;;  %s1980_s11 = smov [#allocation4]  }
  0x2d   : > { %p1788_p2 = scmp.ne.s32.totalorder %s2101_s12, %s1787_s9  ;;  %s1792_s26 = sshll.u32 %s1980_s11, 4  ;;  %s1793_s26 = int_to_ptr.vmem [resolvable:$false] %s1792_s26 }
  0x2e   : > { %s1794_s6 = scalar_lea.vmem %s1793_s26, 512  ;;  %p1795_p9 = scmp.lt.s32.totalorder %s2101_s12, %s1793_s26 }
  0x2f   : > { %p1790_p5 = pnand %p1788_p2, %p1774_p3  ;;  %p1796_p4 = scmp.lt.s32.totalorder %s1794_s6, %s1787_s9 }
  0x31   : > { %p1791_p11 = pneg %p1790_p5  ;;  %p1797_p7 = por %p1796_p4, %p1795_p9 }
  0x33   : > { %p1798_p10 = pnand %p1797_p7, %p1791_p11 }
  0x35   : > { %1801 = shalt.err (!%p1798_p10)
}
  0x36   : > { %s1981_s24 = smov 32   ;;  %s1982_s25 = smov 2  }
  0x37   : > { %1633 = dma.hbm_to_vmem [thread:$0]  (!%p2105_p0), %s2099_s10, 256, %s2101_s12, %s192_s14, %s1981_s24, %s1981_s24, %s1982_s25  }
  0x38   : > { %p233_p12 = scmp.lt.s32.totalorder %s1978_s20, 3  ;;  %s1393_s7 = sshll.u32 %s2092_s5, 5 }
  0x39   : > { %s1442_s8 = sshll.u32 %s1974_s19, 9  ;;  %p2469_p9 = scmp.ge.s32.totalorder %s1978_s20, 1 }
  0x3a   : > { %s2150_s6 = scalar_lea.hbm %s2454_s1, %s1442_s8  ;;  %s218_s22 = scalar_lea.vmem [#allocation7], %s1393_s7 }
  0x3b   : > { %p2143_p11 = pnand %p2469_p9, %p233_p12  ;;  %s225_s0 = sshll.u32 %s218_s22, 4  ;;  %s2152_s0 = int_to_ptr.vmem [resolvable:$true] %s225_s0 }
  0x3c   : > { %s215_s10 = scalar_lea.sflag [#allocation8], %s2092_s5  ;;  %s1802_s12 = scalar_lea.hbm %s2150_s6, 512 }
  0x3d   : > { %p1803_p1 = scmp.ne.s32.totalorder %s2150_s6, %s1802_s12  ;;  %s1807_s25 = scalar_lea.hbm %s2454_s1, 1024 }
  0x3e   : > { %p1808_p2 = scmp.lt.u32.totalorder %s2150_s6, %s2454_s1  ;;  %p1809_p5 = scmp.lt.u32.totalorder %s1807_s25, %s1802_s12 }
  0x3f   : > { %p1805_p6 = pnand %p1803_p1, %p1774_p3  ;;  %p1811_p7 = scmp.lt.u32.totalorder %s1802_s12, %s2150_s6 }
  0x40   : > { %p1810_p4 = por %p1809_p5, %p1808_p2 }
  0x41   : > { %p1806_p13 = pneg %p1805_p6 }
  0x42   : > { %p1812_p10 = por %p1811_p7, %p1810_p4 }
  0x44   : > { %p1813_p12 = pnand %p1812_p10, %p1806_p13 }
  0x46   : > { %1816 = shalt.err (!%p1813_p12)
}
  0x47   : > { %s1817_s22 = scalar_lea.vmem %s2152_s0, 512  ;;  %s1983_s7 = smov [#allocation7]  }
  0x48   : > { %p1818_p9 = scmp.ne.s32.totalorder %s2152_s0, %s1817_s22  ;;  %s1822_s26 = sshll.u32 %s1983_s7, 4  ;;  %s1823_s26 = int_to_ptr.vmem [resolvable:$false] %s1822_s26 }
  0x49   : > { %s1824_s14 = scalar_lea.vmem %s1823_s26, 1024  ;;  %p1825_p8 = scmp.lt.s32.totalorder %s2152_s0, %s1823_s26 }
  0x4a   : > { %p1820_p1 = pnand %p1818_p9, %p1774_p3  ;;  %p1826_p2 = scmp.lt.s32.totalorder %s1824_s14, %s1817_s22 }
  0x4c   : > { %p1821_p6 = pneg %p1820_p1  ;;  %p1827_p5 = por %p1826_p2, %p1825_p8 }
  0x4e   : > { %p1828_p4 = pnand %p1827_p5, %p1821_p6 }
  0x50   : > { %1831 = shalt.err (!%p1828_p4)
}
  0x51   : > { %s1984_s12 = smov 128   ;;  %s1985_s24 = smov 8  }
  0x52   : > { %1636 = dma.hbm_to_vmem [thread:$0]  (!%p2105_p0), %s2150_s6, 512, %s2152_s0, %s215_s10, %s1984_s12, %s1984_s12, %s1985_s24  }
  0x53   : > { %237 = sbr.rel (%p2143_p11) target bundleno = 5788 (0x169c), region = 28  ;;  %s2183_s25 = sand.u32 (!%p2143_p11), 1, %s1962_s16  }
  0x54   : > { %s1397_s8 = sshll.u32 (!%p2143_p11), %s2183_s25, 4  ;;  %s240_s11 = scalar_lea.sflag (!%p2143_p11), [#allocation5], %s2183_s25 }
  0x55   : > { %s2189_s22 = scalar_lea.vmem (!%p2143_p11), [#allocation4], %s1397_s8  ;;  %p2471_p8 = scmp.ne.s32.totalorder (!%p2143_p11), %s2464_s27, 0 }
  0x5a   : > { %1941 = dma.done.wait (%p2471_p8), %s240_s11, 256  }
  0x5b   : > { %1943 = vsyncadd (%p2471_p8), %s240_s11, 4294967040  ;;  %s1398_s0 = sshll.u32 %s2183_s25, 5  ;;  %s249_s5 = scalar_lea.sflag [#allocation8], %s2183_s25 }
  0x5c   : > { %s252_s13 = scalar_lea.vmem [#allocation7], %s1398_s0 }
  0x5d   : > { %1945 = dma.done.wait (%p2471_p8), %s249_s5, 512  }
  0x5e   : > { %1947 = vsyncadd (%p2471_p8), %s249_s5, 4294966784  ;;  %vm298_vm0 = vcmask 254976   ;;  %v1986_v0 = vmov 0.0|0.0   ;;  %vm1987_vm1 = vmmov 0   ;;  %v1988_v1 = vmov 0.0   ;;  %v301_v2 = vld [vmem:[%s252_s13] sm:$0xff] }
  0x5f   : > { %1572 = vmatprep.subr.bf16.mxu0 %v1986_v0  ;;  %1492 = vmatprep.mubr.msk.f32.mxu0 %vm1987_vm1, %v1988_v1  ;;  %299 = vst.msk [vmem:[#allocation2] sm:$0x3] %vm298_vm0, %v1988_v1  ;;  %300 = vst.msk [vmem:[#allocation3] sm:$0x3] %vm298_vm0, %v1988_v1  ;;  %v302_v3 = vld [vmem:[%s252_s13 + $0x8] sm:$0xff]  ;;  %v303_v4 = vld [vmem:[%s252_s13 + $0x10] sm:$0xff] }
  0x60   : > { %1578 = vmatprep.subr.bf16.mxu1 %v1986_v0  ;;  %1503 = vmatprep.mubr.msk.f32.mxu1 %vm1987_vm1, %v1988_v1  ;;  %v2211_v5 = vpack.c.bf16 %v302_v3, %v301_v2  ;;  %v304_v6 = vld [vmem:[%s252_s13 + $0x18] sm:$0xff]  ;;  %vm308_vm2 = vcmask 261120   ;;  %v307_v9 = vld [vmem:[%s2189_s22] sm:$0x3]  ;;  %s2461_s27 = smov 32   ;;  %s1990_s9 = smov 64  }
  0x61   : > { %v2214_v7 = vpack.c.bf16 %v304_v6, %v303_v4  ;;  %s2238_s6 = scalar_lea.vmem [#allocation9], %s1397_s8  ;;  %v1404_v29 = vld [vmem:[%s2189_s22 + $0x2] sm:$0x3]  ;;  %v1408_v47 = vld [vmem:[%s2189_s22 + $0x4] sm:$0x3]  ;;  %s1991_s10 = smov 96  }
  0x62   : > { %1574 = vmatpush3.bf16.msra.mxu0 %v2211_v5  ;;  %1580 = vmatpush3.bf16.msra.mxu1 %v2211_v5  ;;  %v1412_v3 = vld [vmem:[%s2189_s22 + $0x6] sm:$0x3]  ;;  %s1400_s7 = sshll.u32 %s2183_s25, 1  ;;  %s1189_s14 = sshll.u32 %s2238_s6, 4  ;;  %s2330_s14 = int_to_ptr.vmem [resolvable:$true] %s1189_s14 }
  0x63   : > { %1575 = vmatprep.subr.bf16.mxu0 %v1986_v0  ;;  %1581 = vmatprep.subr.bf16.mxu1 %v1986_v0  ;;  %s291_s26 = scalar_lea.vmem [#allocation12], %s1400_s7  ;;  %s1168_s12 = sand.u32 1, %s2052_s21  }
  0x64   : > { %s1437_s24 = sshll.u32 %s1970_s18, 5  ;;  %s284_s8 = scalar_lea.vmem [#allocation10], %s1400_s7 }
  0x65   : > { %s1205_s11 = sshll.u32 %s284_s8, 4  ;;  %s1443_s0 = sshll.u32 %s1970_s18, 8  ;;  %s2338_s11 = int_to_ptr.vmem [resolvable:$true] %s1205_s11 }
  0x66   : > { %1577 = vmatpush3.bf16.msra.mxu0 %v2214_v7  ;;  %v305_v8 = vld [vmem:[#allocation2] sm:$0x3]  ;;  %1583 = vmatpush3.bf16.msra.mxu1 %v2214_v7  ;;  %v306_v14 = vld [vmem:[#allocation3] sm:$0x3]  ;;  %s2356_s5 = scalar_lea.sflag [#allocation11], %s1168_s12  ;;  %s1832_s13 = scalar_lea.vmem %s2338_s11, 32 }
  0x67   : > { %1584 = vmatprep.subr.bf16.mxu0 %v1986_v0  ;;  %1590 = vmatprep.subr.bf16.mxu1 %v1986_v0  ;;  %p1833_p0 = scmp.ne.s32.totalorder %s2338_s11, %s1832_s13  ;;  %p2472_p3 = scmp.ne.s32.totalorder %s2465_s28, 0 }
  0x69   : > { %1493 = vmatmul.mubr.msk.f32.vlgmr.msra.gmra.mrb[0].mxu0 %vm308_vm2, %v305_v8  ;;  %p1834_p11 = pnand %p1833_p0, %p2472_p3 }
  0x6a   : > { %1586 = vmatpush3.bf16.msra.mxu0 %v2211_v5  ;;  %1514 = vmatprep.mubr.msk.f32.mxu0 %vm1987_vm1, %v1988_v1 }
  0x6b   : > { %1587 = vmatprep.subr.bf16.mxu0 %v1986_v0  ;;  %p1835_p13 = pneg %p1834_p11 }
  0x6e   : > { %1589 = vmatpush3.bf16.msra.mxu0 %v2214_v7 }
  0x6f   : > { %1596 = vmatprep.subr.bf16.mxu0 %v1986_v0 }
 0x13c   : > { %v378_v10 = vpop.f32.mrb[0].mxu0 }
 0x13d   : > { %v382_v11 = vadd.f32 %v378_v10, %v307_v9  ;;  %v1494_v12 = vpop.f32.mrb[1].mxu0 }
 0x13f   : > { %1708 = vtanh.f32 %v382_v11  ;;  %v1403_v15 = vmul.f32 -1.442695, %v382_v11 }
 0x141   : > { %1710 = vpow2.f32 %v1403_v15 }
 0x149   : > { %v1709_v13 = vpop.eup %1708 }
 0x14a   : > { %396 = vrot.lane.b32.xlu0 %v1709_v13, %s2461_s27 }
 0x14b   : > { %v1711_v16 = vpop.eup %1710 }
 0x14c   : > { %v386_v17 = vadd.f32 1.0, %v1711_v16 }
 0x14e   : > { %391 = vrot.lane.b32.xlu0 %v306_v14, %s2461_s27  ;;  %1712 = vrcp.f32 %v386_v17 }
 0x158   : > { %v1713_v18 = vpop.eup %1712 }
 0x1bc   : > { %v397_v19 = vpop.permute.xlu0 %396 }
 0x1bd   : > { %v399_v20 = vmul.f32 %v1713_v18, %v397_v19 }
 0x1bf   : > { %401 = vrot.lane.b32.xlu1 %v399_v20, %s2461_s27 }
 0x1c0   : > { %v392_v21 = vpop.permute.xlu0 %391 }
 0x1c1   : > { %v394_v22 = vmul.f32 %v1713_v18, %v392_v21 }
 0x231   : > { %v402_v23 = vpop.permute.xlu1 %401 }
 0x232   : > { %v404_v24 = vadd.f32 %v402_v23, %v394_v22  ;;  %v1416_v23 = vld [vmem:[%s2189_s22 + $0x8] sm:$0x3] }
 0x234   : > { %1714 = vtanh.f32 %v404_v24 }
 0x23e   : > { %v1715_v25 = vpop.eup %1714 }
 0x23f   : > { %407 = vrot.lane.b32.xlu1 %v1715_v25, %s2461_s27 }
 0x2b1   : > { %v408_v26 = vpop.permute.xlu1 %407 }
 0x2b2   : > { %v410_v27 = vmul.f32 %v1713_v18, %v408_v26 }
 0x2b4   : > { %412 = vrot.lane.b32.xlu0 %v410_v27, %s1990_s9 }
 0x326   : > { %v413_v28 = vpop.permute.xlu0 %412 }
 0x327   : > { %416 = vst.msk [vmem:[%s2238_s6] sm:$0x3] %vm298_vm0, %v413_v28  ;;  %1504 = vmatmul.mubr.msk.f32.vlgmr.msra.gmra.mrb[0].mxu1 %vm308_vm2, %v413_v28 }
 0x328   : > { %1592 = vmatpush3.bf16.msra.mxu1 %v2211_v5  ;;  %1525 = vmatprep.mubr.msk.f32.mxu1 %vm1987_vm1, %v1988_v1 }
 0x329   : > { %1593 = vmatprep.subr.bf16.mxu1 %v1986_v0 }
 0x32c   : > { %1595 = vmatpush3.bf16.msra.mxu1 %v2214_v7 }
 0x32d   : > { %1602 = vmatprep.subr.bf16.mxu1 %v1986_v0 }
 0x3fa   : > { %v487_v30 = vpop.f32.mrb[0].mxu1 }
 0x3fb   : > { %v491_v31 = vadd.f32 %v1404_v29, %v487_v30  ;;  %v1505_v32 = vpop.f32.mrb[1].mxu1 }
 0x3fd   : > { %1716 = vtanh.f32 %v491_v31  ;;  %v1406_v34 = vmul.f32 -1.442695, %v491_v31 }
 0x3ff   : > { %1718 = vpow2.f32 %v1406_v34 }
 0x407   : > { %v1717_v33 = vpop.eup %1716 }
 0x408   : > { %501 = vrot.lane.b32.xlu1 %v1717_v33, %s2461_s27 }
 0x409   : > { %v1719_v35 = vpop.eup %1718 }
 0x40a   : > { %v495_v36 = vadd.f32 1.0, %v1719_v35 }
 0x40c   : > { %1720 = vrcp.f32 %v495_v36 }
 0x416   : > { %v1721_v37 = vpop.eup %1720 }
 0x417   : > { %v499_v40 = vmul.f32 %v1721_v37, %v404_v24 }
 0x47a   : > { %v502_v38 = vpop.permute.xlu1 %501 }
 0x47b   : > { %v504_v39 = vmul.f32 %v1721_v37, %v502_v38 }
 0x47d   : > { %506 = vrot.lane.b32.xlu0 %v504_v39, %s2461_s27 }
 0x4ef   : > { %v507_v41 = vpop.permute.xlu0 %506 }
 0x4f0   : > { %v509_v42 = vadd.f32 %v507_v41, %v499_v40  ;;  %v1420_v41 = vld [vmem:[%s2189_s22 + $0xa] sm:$0x3] }
 0x4f2   : > { %1722 = vtanh.f32 %v509_v42 }
 0x4fc   : > { %v1723_v43 = vpop.eup %1722 }
 0x4fd   : > { %512 = vrot.lane.b32.xlu1 %v1723_v43, %s2461_s27 }
 0x56f   : > { %v513_v44 = vpop.permute.xlu1 %512 }
 0x570   : > { %v515_v45 = vmul.f32 %v1721_v37, %v513_v44 }
 0x572   : > { %517 = vrot.lane.b32.xlu0 %v515_v45, %s1990_s9 }
 0x5e4   : > { %v518_v46 = vpop.permute.xlu0 %517 }
 0x5e5   : > { %1407 = vst.msk [vmem:[%s2238_s6 + $0x2] sm:$0x3] %vm298_vm0, %v518_v46  ;;  %1515 = vmatmul.mubr.msk.f32.vlgmr.msra.gmra.mrb[2].mxu0 %vm308_vm2, %v518_v46 }
 0x5e6   : > { %1598 = vmatpush3.bf16.msra.mxu0 %v2211_v5  ;;  %1536 = vmatprep.mubr.msk.f32.mxu0 %vm1987_vm1, %v1988_v1 }
 0x5e7   : > { %1599 = vmatprep.subr.bf16.mxu0 %v1986_v0 }
 0x5ea   : > { %1601 = vmatpush3.bf16.msra.mxu0 %v2214_v7 }
 0x5eb   : > { %1608 = vmatprep.subr.bf16.mxu0 %v1986_v0 }
 0x6b8   : > { %v592_v48 = vpop.f32.mrb[2].mxu0 }
 0x6b9   : > { %v596_v49 = vadd.f32 %v1408_v47, %v592_v48  ;;  %v1516_v50 = vpop.f32.mrb[3].mxu0 }
 0x6bb   : > { %1724 = vtanh.f32 %v596_v49  ;;  %v1410_v52 = vmul.f32 -1.442695, %v596_v49 }
 0x6bd   : > { %1726 = vpow2.f32 %v1410_v52 }
 0x6c5   : > { %v1725_v51 = vpop.eup %1724 }
 0x6c6   : > { %606 = vrot.lane.b32.xlu1 %v1725_v51, %s2461_s27 }
 0x6c7   : > { %v1727_v53 = vpop.eup %1726 }
 0x6c8   : > { %v600_v54 = vadd.f32 1.0, %v1727_v53 }
 0x6ca   : > { %1728 = vrcp.f32 %v600_v54 }
 0x6d4   : > { %v1729_v55 = vpop.eup %1728 }
 0x6d5   : > { %v604_v58 = vmul.f32 %v1729_v55, %v509_v42 }
 0x738   : > { %v607_v56 = vpop.permute.xlu1 %606 }
 0x739   : > { %v609_v57 = vmul.f32 %v1729_v55, %v607_v56 }
 0x73b   : > { %611 = vrot.lane.b32.xlu0 %v609_v57, %s2461_s27 }
 0x7ad   : > { %v612_v59 = vpop.permute.xlu0 %611 }
 0x7ae   : > { %v614_v60 = vadd.f32 %v612_v59, %v604_v58 }
 0x7b0   : > { %1730 = vtanh.f32 %v614_v60 }
 0x7ba   : > { %v1731_v61 = vpop.eup %1730 }
 0x7bb   : > { %617 = vrot.lane.b32.xlu1 %v1731_v61, %s2461_s27 }
 0x82d   : > { %v618_v62 = vpop.permute.xlu1 %617 }
 0x82e   : > { %v620_v63 = vmul.f32 %v1729_v55, %v618_v62  ;;  %v1424_v55 = vld [vmem:[%s2189_s22 + $0xc] sm:$0x3] }
 0x830   : > { %622 = vrot.lane.b32.xlu0 %v620_v63, %s1990_s9 }
 0x8a2   : > { %v623_v2 = vpop.permute.xlu0 %622 }
 0x8a3   : > { %1411 = vst.msk [vmem:[%s2238_s6 + $0x4] sm:$0x3] %vm298_vm0, %v623_v2  ;;  %1526 = vmatmul.mubr.msk.f32.vlgmr.msra.gmra.mrb[2].mxu1 %vm308_vm2, %v623_v2 }
 0x8a4   : > { %1604 = vmatpush3.bf16.msra.mxu1 %v2211_v5  ;;  %1547 = vmatprep.mubr.msk.f32.mxu1 %vm1987_vm1, %v1988_v1 }
 0x8a5   : > { %1605 = vmatprep.subr.bf16.mxu1 %v1986_v0 }
 0x8a8   : > { %1607 = vmatpush3.bf16.msra.mxu1 %v2214_v7 }
 0x8a9   : > { %1614 = vmatprep.subr.bf16.mxu1 %v1986_v0 }
 0x976   : > { %v697_v4 = vpop.f32.mrb[2].mxu1 }
 0x977   : > { %v701_v6 = vadd.f32 %v1412_v3, %v697_v4  ;;  %v1527_v8 = vpop.f32.mrb[3].mxu1 }
 0x979   : > { %1732 = vtanh.f32 %v701_v6  ;;  %v1414_v10 = vmul.f32 -1.442695, %v701_v6 }
 0x97b   : > { %1734 = vpow2.f32 %v1414_v10 }
 0x983   : > { %v1733_v9 = vpop.eup %1732 }
 0x984   : > { %711 = vrot.lane.b32.xlu1 %v1733_v9, %s2461_s27 }
 0x985   : > { %v1735_v11 = vpop.eup %1734 }
 0x986   : > { %v705_v12 = vadd.f32 1.0, %v1735_v11 }
 0x988   : > { %1736 = vrcp.f32 %v705_v12 }
 0x992   : > { %v1737_v13 = vpop.eup %1736 }
 0x993   : > { %v709_v16 = vmul.f32 %v1737_v13, %v614_v60 }
 0x9f6   : > { %v712_v14 = vpop.permute.xlu1 %711 }
 0x9f7   : > { %v714_v15 = vmul.f32 %v1737_v13, %v712_v14 }
 0x9f9   : > { %716 = vrot.lane.b32.xlu0 %v714_v15, %s2461_s27 }
 0xa6b   : > { %v717_v17 = vpop.permute.xlu0 %716 }
 0xa6c   : > { %v719_v18 = vadd.f32 %v717_v17, %v709_v16 }
 0xa6e   : > { %1738 = vtanh.f32 %v719_v18 }
 0xa78   : > { %v1739_v19 = vpop.eup %1738 }
 0xa79   : > { %722 = vrot.lane.b32.xlu1 %v1739_v19, %s2461_s27 }
 0xaeb   : > { %v723_v20 = vpop.permute.xlu1 %722 }
 0xaec   : > { %v725_v21 = vmul.f32 %v1737_v13, %v723_v20  ;;  %v1428_v13 = vld [vmem:[%s2189_s22 + $0xe] sm:$0x3]  ;;  %s1218_s22 = sshll.u32 %s291_s26, 4  ;;  %s2354_s22 = int_to_ptr.vmem [resolvable:$true] %s1218_s22 }
 0xaee   : > { %727 = vrot.lane.b32.xlu0 %v725_v21, %s1990_s9 }
 0xb60   : > { %v728_v22 = vpop.permute.xlu0 %727 }
 0xb61   : > { %1415 = vst.msk [vmem:[%s2238_s6 + $0x6] sm:$0x3] %vm298_vm0, %v728_v22  ;;  %1537 = vmatmul.mubr.msk.f32.vlgmr.msra.gmra.mrb[4].mxu0 %vm308_vm2, %v728_v22 }
 0xb62   : > { %1610 = vmatpush3.bf16.msra.mxu0 %v2211_v5  ;;  %1558 = vmatprep.mubr.msk.f32.mxu0 %vm1987_vm1, %v1988_v1 }
 0xb63   : > { %1611 = vmatprep.subr.bf16.mxu0 %v1986_v0 }
 0xb66   : > { %1613 = vmatpush3.bf16.msra.mxu0 %v2214_v7 }
 0xc34   : > { %v802_v24 = vpop.f32.mrb[4].mxu0 }
 0xc35   : > { %v806_v25 = vadd.f32 %v1416_v23, %v802_v24  ;;  %v1538_v26 = vpop.f32.mrb[5].mxu0 }
 0xc37   : > { %1740 = vtanh.f32 %v806_v25  ;;  %v1418_v28 = vmul.f32 -1.442695, %v806_v25 }
 0xc39   : > { %1742 = vpow2.f32 %v1418_v28 }
 0xc41   : > { %v1741_v27 = vpop.eup %1740 }
 0xc42   : > { %816 = vrot.lane.b32.xlu1 %v1741_v27, %s2461_s27 }
 0xc43   : > { %v1743_v29 = vpop.eup %1742 }
 0xc44   : > { %v810_v30 = vadd.f32 1.0, %v1743_v29 }
 0xc46   : > { %1744 = vrcp.f32 %v810_v30 }
 0xc50   : > { %v1745_v31 = vpop.eup %1744 }
 0xc51   : > { %v814_v34 = vmul.f32 %v1745_v31, %v719_v18 }
 0xcb4   : > { %v817_v32 = vpop.permute.xlu1 %816 }
 0xcb5   : > { %v819_v33 = vmul.f32 %v1745_v31, %v817_v32 }
 0xcb7   : > { %821 = vrot.lane.b32.xlu0 %v819_v33, %s2461_s27 }
 0xd29   : > { %v822_v35 = vpop.permute.xlu0 %821 }
 0xd2a   : > { %v824_v36 = vadd.f32 %v822_v35, %v814_v34 }
 0xd2c   : > { %1746 = vtanh.f32 %v824_v36 }
 0xd36   : > { %v1747_v37 = vpop.eup %1746 }
 0xd37   : > { %827 = vrot.lane.b32.xlu1 %v1747_v37, %s2461_s27 }
 0xda9   : > { %v828_v38 = vpop.permute.xlu1 %827 }
 0xdaa   : > { %v830_v39 = vmul.f32 %v1745_v31, %v828_v38 }
 0xdac   : > { %832 = vrot.lane.b32.xlu0 %v830_v39, %s1990_s9 }
 0xe1e   : > { %v833_v40 = vpop.permute.xlu0 %832 }
 0xe1f   : > { %1419 = vst.msk [vmem:[%s2238_s6 + $0x8] sm:$0x3] %vm298_vm0, %v833_v40  ;;  %1548 = vmatmul.mubr.msk.f32.vlgmr.msra.gmra.mrb[4].mxu1 %vm308_vm2, %v833_v40 }
 0xe20   : > { %1616 = vmatpush3.bf16.msra.mxu1 %v2211_v5  ;;  %1569 = vmatprep.mubr.msk.f32.mxu1 %vm1987_vm1, %v1988_v1 }
 0xe21   : > { %1617 = vmatprep.subr.bf16.mxu1 %v1986_v0 }
 0xe24   : > { %1619 = vmatpush3.bf16.msra.mxu1 %v2214_v7 }
 0xef2   : > { %v907_v42 = vpop.f32.mrb[4].mxu1 }
 0xef3   : > { %v911_v43 = vadd.f32 %v1420_v41, %v907_v42  ;;  %v1549_v44 = vpop.f32.mrb[5].mxu1 }
 0xef5   : > { %1748 = vtanh.f32 %v911_v43  ;;  %v1422_v46 = vmul.f32 -1.442695, %v911_v43 }
 0xef7   : > { %1750 = vpow2.f32 %v1422_v46 }
 0xeff   : > { %v1749_v45 = vpop.eup %1748 }
 0xf00   : > { %921 = vrot.lane.b32.xlu1 %v1749_v45, %s2461_s27 }
 0xf01   : > { %v1751_v47 = vpop.eup %1750 }
 0xf02   : > { %v915_v48 = vadd.f32 1.0, %v1751_v47 }
 0xf04   : > { %1752 = vrcp.f32 %v915_v48 }
 0xf0e   : > { %v1753_v5 = vpop.eup %1752 }
 0xf0f   : > { %v919_v7 = vmul.f32 %v1753_v5, %v824_v36 }
 0xf72   : > { %v922_v1 = vpop.permute.xlu1 %921 }
 0xf73   : > { %v924_v0 = vmul.f32 %v1753_v5, %v922_v1 }
 0xf75   : > { %926 = vrot.lane.b32.xlu0 %v924_v0, %s2461_s27 }
 0xfe7   : > { %v927_v49 = vpop.permute.xlu0 %926 }
 0xfe8   : > { %v929_v50 = vadd.f32 %v927_v49, %v919_v7 }
 0xfea   : > { %1754 = vtanh.f32 %v929_v50 }
 0xff4   : > { %v1755_v51 = vpop.eup %1754 }
 0xff5   : > { %932 = vrot.lane.b32.xlu1 %v1755_v51, %s2461_s27 }
0x1067   : > { %v933_v52 = vpop.permute.xlu1 %932 }
0x1068   : > { %v935_v53 = vmul.f32 %v1753_v5, %v933_v52 }
0x106a   : > { %937 = vrot.lane.b32.xlu0 %v935_v53, %s1990_s9 }
0x10dc   : > { %v938_v54 = vpop.permute.xlu0 %937 }
0x10dd   : > { %1423 = vst.msk [vmem:[%s2238_s6 + $0xa] sm:$0x3] %vm298_vm0, %v938_v54  ;;  %1559 = vmatmul.mubr.msk.f32.vlgmr.msra.gmra.mrb[6].mxu0 %vm308_vm2, %v938_v54 }
0x11b0   : > { %v1012_v56 = vpop.f32.mrb[6].mxu0 }
0x11b1   : > { %v1016_v57 = vadd.f32 %v1424_v55, %v1012_v56  ;;  %v1560_v58 = vpop.f32.mrb[7].mxu0 }
0x11b3   : > { %1756 = vtanh.f32 %v1016_v57  ;;  %v1426_v60 = vmul.f32 -1.442695, %v1016_v57 }
0x11b5   : > { %1758 = vpow2.f32 %v1426_v60 }
0x11bd   : > { %v1757_v59 = vpop.eup %1756 }
0x11be   : > { %1026 = vrot.lane.b32.xlu1 %v1757_v59, %s2461_s27 }
0x11bf   : > { %v1759_v61 = vpop.eup %1758 }
0x11c0   : > { %v1020_v62 = vadd.f32 1.0, %v1759_v61 }
0x11c2   : > { %1760 = vrcp.f32 %v1020_v62 }
0x11cc   : > { %v1761_v63 = vpop.eup %1760 }
0x11cd   : > { %v1024_v4 = vmul.f32 %v1761_v63, %v929_v50 }
0x1230   : > { %v1027_v2 = vpop.permute.xlu1 %1026 }
0x1231   : > { %v1029_v3 = vmul.f32 %v1761_v63, %v1027_v2 }
0x1233   : > { %1031 = vrot.lane.b32.xlu0 %v1029_v3, %s2461_s27 }
0x12a5   : > { %v1032_v6 = vpop.permute.xlu0 %1031 }
0x12a6   : > { %v1034_v8 = vadd.f32 %v1032_v6, %v1024_v4 }
0x12a8   : > { %1762 = vtanh.f32 %v1034_v8 }
0x12b2   : > { %v1763_v9 = vpop.eup %1762 }
0x12b3   : > { %1037 = vrot.lane.b32.xlu1 %v1763_v9, %s2461_s27 }
0x1325   : > { %v1038_v10 = vpop.permute.xlu1 %1037 }
0x1326   : > { %v1040_v11 = vmul.f32 %v1761_v63, %v1038_v10 }
0x1328   : > { %1042 = vrot.lane.b32.xlu0 %v1040_v11, %s1990_s9 }
0x139a   : > { %v1043_v12 = vpop.permute.xlu0 %1042 }
0x139b   : > { %1427 = vst.msk [vmem:[%s2238_s6 + $0xc] sm:$0x3] %vm298_vm0, %v1043_v12  ;;  %1570 = vmatmul.mubr.msk.f32.vlgmr.msra.gmra.mrb[6].mxu1 %vm308_vm2, %v1043_v12 }
0x146e   : > { %v1117_v14 = vpop.f32.mrb[6].mxu1 }
0x146f   : > { %v1121_v15 = vadd.f32 %v1428_v13, %v1117_v14  ;;  %v1571_v16 = vpop.f32.mrb[7].mxu1 }
0x1471   : > { %1764 = vtanh.f32 %v1121_v15  ;;  %v1430_v18 = vmul.f32 -1.442695, %v1121_v15 }
0x1473   : > { %1766 = vpow2.f32 %v1430_v18 }
0x147b   : > { %v1765_v17 = vpop.eup %1764 }
0x147c   : > { %1131 = vrot.lane.b32.xlu1 %v1765_v17, %s2461_s27 }
0x147d   : > { %v1767_v19 = vpop.eup %1766 }
0x147e   : > { %v1125_v20 = vadd.f32 1.0, %v1767_v19 }
0x1480   : > { %1768 = vrcp.f32 %v1125_v20 }
0x148a   : > { %v1769_v21 = vpop.eup %1768 }
0x148b   : > { %v1129_v24 = vmul.f32 %v1769_v21, %v1034_v8 }
0x14ee   : > { %v1132_v22 = vpop.permute.xlu1 %1131 }
0x14ef   : > { %v1134_v23 = vmul.f32 %v1769_v21, %v1132_v22 }
0x14f1   : > { %1136 = vrot.lane.b32.xlu0 %v1134_v23, %s2461_s27 }
0x1563   : > { %v1137_v25 = vpop.permute.xlu0 %1136 }
0x1564   : > { %v1139_v26 = vadd.f32 %v1137_v25, %v1129_v24 }
0x1566   : > { %1770 = vtanh.f32 %v1139_v26 }
0x1570   : > { %v1771_v27 = vpop.eup %1770 }
0x1571   : > { %1142 = vrot.lane.b32.xlu1 %v1771_v27, %s2461_s27  ;;  %s2343_s27 = scalar_lea.hbm %s2455_s2, %s1443_s0  ;;  %s1992_s0 = smov [#allocation10]  }
0x1575   : > { %1154 = vrot.lane.b32.xlu1 %v1139_v26, %s1991_s10 }
0x15e3   : > { %v1143_v28 = vpop.permute.xlu1 %1142 }
0x15e4   : > { %v1145_v29 = vmul.f32 %v1769_v21, %v1143_v28 }
0x15e6   : > { %1147 = vrot.lane.b32.xlu0 %v1145_v29, %s1990_s9  ;;  %s2336_s9 = scalar_lea.hbm %s2456_s3, %s1437_s24 }
0x15e7   : > { %v1155_v30 = vpop.permute.xlu1 %1154 }
0x15e8   : > { %1157 = vst.msk [vmem:[#allocation3] sm:$0x3] %vm298_vm0, %v1155_v30  ;;  %1162 = vst.msk [vmem:[%s291_s26] sm:$0x3] %vm298_vm0, %v1155_v30  ;;  %s2352_s26 = scalar_lea.hbm %s2457_s4, %s1437_s24 }
0x1658   : > { %v1148_v31 = vpop.permute.xlu0 %1147 }
0x1659   : > { %1431 = vst.msk [vmem:[%s2238_s6 + $0xe] sm:$0x3] %vm298_vm0, %v1148_v31  ;;  %1152 = vst.msk [vmem:[#allocation2] sm:$0x3] %vm298_vm0, %v1148_v31  ;;  %s1836_s6 = sshll.u32 %s1992_s0, 4  ;;  %s1837_s6 = int_to_ptr.vmem [resolvable:$false] %s1836_s6 }
0x165a   : > { %1161 = vst.msk [vmem:[%s284_s8] sm:$0x3] %vm298_vm0, %v1148_v31  ;;  %s1838_s10 = scalar_lea.vmem %s1837_s6, 64  ;;  %p1839_p7 = scmp.lt.s32.totalorder %s2338_s11, %s1837_s6 }
0x165b   : > { %p1840_p10 = scmp.lt.s32.totalorder %s1838_s10, %s1832_s13 }
0x165d   : > { %p1841_p12 = por %p1840_p10, %p1839_p7 }
0x165f   : > { %p1842_p9 = pnand %p1841_p12, %p1835_p13 }
0x1661   : > { %1845 = shalt.err (!%p1842_p9)
}
0x1662   : > { %s1846_s12 = scalar_lea.hbm %s2336_s9, 32  ;;  %s1850_s21 = scalar_lea.hbm %s2456_s3, 64 }
0x1663   : > { %p1847_p1 = scmp.ne.s32.totalorder %s2336_s9, %s1846_s12  ;;  %p1851_p5 = scmp.lt.u32.totalorder %s2336_s9, %s2456_s3 }
0x1664   : > { %p1852_p4 = scmp.lt.u32.totalorder %s1850_s21, %s1846_s12  ;;  %p1854_p0 = scmp.lt.u32.totalorder %s1846_s12, %s2336_s9 }
0x1665   : > { %p1848_p6 = pnand %p1847_p1, %p2472_p3 }
0x1666   : > { %p1853_p8 = por %p1852_p4, %p1851_p5 }
0x1667   : > { %p1849_p2 = pneg %p1848_p6 }
0x1668   : > { %p1855_p11 = por %p1854_p0, %p1853_p8 }
0x166a   : > { %p1856_p13 = pnand %p1855_p11, %p1849_p2 }
0x166c   : > { %1859 = shalt.err (!%p1856_p13)
}
0x166d   : > { %1625 = dma.vmem_to_hbm [thread:$0]  (%p2472_p3), %s2338_s11, 32, %s2336_s9, %s2356_s5  }
0x166e   : > { %s1164_s13 = scalar_lea.sflag [#allocation6], %s2183_s25  ;;  %s1860_s0 = scalar_lea.vmem %s2330_s14, 256 }
0x166f   : > { %p1861_p7 = scmp.ne.s32.totalorder %s2330_s14, %s1860_s0  ;;  %s1993_s6 = smov [#allocation9]  }
0x1670   : > { %s1864_s10 = sshll.u32 %s1993_s6, 4  ;;  %s1865_s10 = int_to_ptr.vmem [resolvable:$false] %s1864_s10 }
0x1671   : > { %p1862_p10 = pnand %p1861_p7, %p2472_p3  ;;  %s1866_s12 = scalar_lea.vmem %s1865_s10, 512 }
0x1672   : > { %p1867_p9 = scmp.lt.s32.totalorder %s2330_s14, %s1865_s10  ;;  %p1868_p1 = scmp.lt.s32.totalorder %s1866_s12, %s1860_s0 }
0x1673   : > { %p1863_p12 = pneg %p1862_p10 }
0x1674   : > { %p1869_p6 = por %p1868_p1, %p1867_p9 }
0x1676   : > { %p1870_p2 = pnand %p1869_p6, %p1863_p12 }
0x1678   : > { %1873 = shalt.err (!%p1870_p2)
}
0x1679   : > { %s1874_s11 = scalar_lea.hbm %s2343_s27, 256  ;;  %s1878_s8 = scalar_lea.hbm %s2455_s2, 512 }
0x167a   : > { %p1875_p5 = scmp.ne.s32.totalorder %s2343_s27, %s1874_s11  ;;  %p1879_p0 = scmp.lt.u32.totalorder %s2343_s27, %s2455_s2 }
0x167b   : > { %p1880_p11 = scmp.lt.u32.totalorder %s1878_s8, %s1874_s11  ;;  %p1882_p7 = scmp.lt.u32.totalorder %s1874_s11, %s2343_s27 }
0x167c   : > { %p1876_p4 = pnand %p1875_p5, %p2472_p3 }
0x167d   : > { %p1881_p13 = por %p1880_p11, %p1879_p0 }
0x167e   : > { %p1877_p8 = pneg %p1876_p4 }
0x167f   : > { %p1883_p10 = por %p1882_p7, %p1881_p13 }
0x1681   : > { %p1884_p12 = pnand %p1883_p10, %p1877_p8 }
0x1683   : > { %1887 = shalt.err (!%p1884_p12)
}
0x1684   : > { %s1994_s7 = smov 2   ;;  %s2473_s0 = smov 32  }
0x1685   : > { %1624 = dma.vmem_to_hbm [thread:$0]  (%p2472_p3), %s2330_s14, 256, %s2343_s27, %s1164_s13, %s2473_s0, %s2473_s0, %s1994_s7  }
0x1686   : > { %s1888_s6 = scalar_lea.vmem %s2354_s22, 32  ;;  %s1995_s10 = smov [#allocation12]  }
0x1687   : > { %p1889_p9 = scmp.ne.s32.totalorder %s2354_s22, %s1888_s6  ;;  %s1892_s12 = sshll.u32 %s1995_s10, 4  ;;  %s1893_s12 = int_to_ptr.vmem [resolvable:$false] %s1892_s12 }
0x1688   : > { %s1894_s11 = scalar_lea.vmem %s1893_s12, 64  ;;  %p1895_p2 = scmp.lt.s32.totalorder %s2354_s22, %s1893_s12 }
0x1689   : > { %p1890_p1 = pnand %p1889_p9, %p2472_p3  ;;  %p1896_p5 = scmp.lt.s32.totalorder %s1894_s11, %s1888_s6 }
0x168b   : > { %p1891_p6 = pneg %p1890_p1  ;;  %p1897_p4 = por %p1896_p5, %p1895_p2 }
0x168d   : > { %p1898_p8 = pnand %p1897_p4, %p1891_p6 }
0x168f   : > { %1901 = shalt.err (!%p1898_p8)
}
0x1690   : > { %s1902_s25 = scalar_lea.hbm %s2352_s26, 32  ;;  %s1906_s13 = scalar_lea.hbm %s2457_s4, 64 }
0x1691   : > { %p1903_p0 = scmp.ne.s32.totalorder %s2352_s26, %s1902_s25  ;;  %p1907_p7 = scmp.lt.u32.totalorder %s2352_s26, %s2457_s4 }
0x1692   : > { %p1908_p10 = scmp.lt.u32.totalorder %s1906_s13, %s1902_s25  ;;  %p1910_p9 = scmp.lt.u32.totalorder %s1902_s25, %s2352_s26 }
0x1693   : > { %p1904_p11 = pnand %p1903_p0, %p2472_p3 }
0x1694   : > { %p1909_p12 = por %p1908_p10, %p1907_p7 }
0x1695   : > { %p1905_p13 = pneg %p1904_p11 }
0x1696   : > { %p1911_p1 = por %p1910_p9, %p1909_p12 }
0x1698   : > { %p1912_p6 = pnand %p1911_p1, %p1905_p13 }
0x169a   : > { %1915 = shalt.err (!%p1912_p6)
}
0x169b   : > { %1626 = dma.vmem_to_hbm [thread:$0]  (%p2472_p3), %s2354_s22, 32, %s2352_s26, %s2356_s5  }
0x169c PF: > { %s1230_s8 = sand.u32 1, %s1958_s15   ;;  %p2474_p2 = scmp.ne.s32.totalorder %s2466_s30, 0 }
0x169d   : > { %p2475_p5 = scmp.ge.s32.totalorder %s1978_s20, 2  ;;  %s1231_s21 = scalar_lea.sflag [#allocation6], %s1230_s8 }
0x169f   : > { %p1638_p4 = pnand %p2475_p5, %p2474_p2 }
0x16a1   : > { %1949 = dma.done.wait (!%p1638_p4), %s1231_s21, 256  }
0x16a2   : > { %1951 = vsyncadd (!%p1638_p4), %s1231_s21, 4294967040  ;;  %s2476_s18 = sadd.s32 4294967294, %s1978_s20  }
0x16a3   : > { %s1239_s7 = sand.u32 1, %s2476_s18  }
0x16a4   : > { %s1240_s0 = scalar_lea.sflag [#allocation11], %s1239_s7 }
0x16a5   : > { %1953 = dma.done.wait (!%p1638_p4), %s1240_s0, 64  }
0x16a6   : > { %1955 = vsyncadd (!%p1638_p4), %s1240_s0, 4294967232  ;;  %s27_s20 = sadd.s32 1, %s1978_s20   ;;  %s2477_s15 = smov %s1962_s16 }
0x16a7   : > { %p24_p3 = scmp.ge.s32.totalorder %s27_s20, 4   ;;  %s2478_s16 = smov %s1966_s17 }
0x16a8   : > { %s2479_s17 = smov %s2083_s29  ;;  %s2480_s18 = smov %s1974_s19 }
0x16a9   : > { %s2481_s19 = smov %s2483_s23  ;;  %26 = sbr.rel (!%p24_p3) target bundleno = 12 (0xc), region = 140 }
0x16b0   :  { %1254 = vsyncpa [#allocation5], 1 }
0x16b1   :  { %1256 = vsyncpa [#allocation5 + $0x1], 1 }
0x16b2   :  { %1257 = vsyncpa [#allocation8], 1 }
0x16b3   :  { %1259 = vsyncpa [#allocation8 + $0x1], 1 }
0x16b4   :  { %1260 = vsyncpa [#allocation6], 1 }
0x16b5   :  { %1262 = vsyncpa [#allocation6 + $0x1], 1 }
0x16b6   :  { %1263 = vsyncpa [#allocation11], 1 }
0x16b7   :  { %1265 = vsyncpa [#allocation11 + $0x1], 1 }

</bundles_post_ra>
